<compile_context>
chip_gen: v7x
topology: tpu7x:2x2x1
jax: 0.10.0
libtpu: 0.0.40
codegen_flags: <defaults>
</compile_context>

<pallas_src>
import math

import jax
import jax.numpy as jnp
from jax.experimental import pallas as pl
from jax.experimental.pallas import tpu as pltpu

BERT_DIM = 768
LANE = 128
SUBLANE = 8
ROW_TILE_CAP = 512                      # feedback: 256 -> 512
VMEM_LIMIT = 32 * 1024 * 1024           # explicit scoped-VMEM limit (safe on all gens)

NODE_TYPES = ("claim", "premise", "super_node")
EDGE_TYPES = (
    ("claim", "claim"),
    ("claim", "premise"),
    ("premise", "claim"),
    ("premise", "premise"),
    ("premise", "super_node"),
    ("claim", "super_node"),
)
# Edge types grouped by destination, in EDGE_TYPES order.
DST_EDGES = {dst: [et for et in EDGE_TYPES if et[1] == dst] for dst in NODE_TYPES}
E_PER_DST = len(DST_EDGES[NODE_TYPES[0]])
assert all(len(v) == E_PER_DST for v in DST_EDGES.values())
SUPER_IDX = NODE_TYPES.index("super_node")


# ---------------------------------------------------------------------------
# Small shape helpers
# ---------------------------------------------------------------------------
def _pad_to(n, m):
    return ((n + m - 1) // m) * m


def _row_tiling(n):
    """padded row count for n real rows (mult of 8, or mult of 512 if large)."""
    n = max(n, SUBLANE)
    if n <= ROW_TILE_CAP:
        return _pad_to(n, SUBLANE)
    return _pad_to(n, ROW_TILE_CAP)


def _tile_for(n_pad):
    return n_pad if n_pad <= ROW_TILE_CAP else ROW_TILE_CAP


def _pad2(a, rows, cols, dtype):
    out = jnp.zeros((rows, cols), dtype=dtype)
    return out.at[: a.shape[0], : a.shape[1]].set(a.astype(dtype))


# ---------------------------------------------------------------------------
# Kernels
# ---------------------------------------------------------------------------
def _input_proj_kernel(x_ref, w_ref, b_ref, o_ref):
    # x:[TB,768] bf16, w:[768,H1] bf16, b:[1,H1] f32 -> relu(x@w+b) bf16
    acc = jnp.dot(x_ref[...], w_ref[...], preferred_element_type=jnp.float32)
    acc = acc + b_ref[...]
    o_ref[...] = jnp.maximum(acc, 0.0).astype(o_ref.dtype)


def _hetero_sage_kernel(srcmap_ref, adj_ref, hsrc_ref, hdst_ref,
                        wl_ref, wr_ref, b_ref, o_ref, acc_ref):
    # grid = (dst_type, row_tile, edge_type); edge_type is the reduction axis.
    # adj:[TB,Ns] bf16 (row-normalized mean weights), hsrc:[Ns,Hin] bf16,
    # hdst:[TB,Hin] bf16, wl:[Hin,Hout] bf16, wr(=sum_e Wr_e):[Hin,Hout] bf16,
    # b(=sum_e b_e):[1,Hout] f32, acc:[TB,Hout] f32 scratch.
    e = pl.program_id(2)

    @pl.when(e == 0)
    def _():
        acc_ref[...] = (
            jnp.dot(hdst_ref[...], wr_ref[...], preferred_element_type=jnp.float32)
            + b_ref[...])

    agg = jnp.dot(adj_ref[...], hsrc_ref[...], preferred_element_type=jnp.float32)
    acc_ref[...] += jnp.dot(agg.astype(jnp.bfloat16), wl_ref[...],
                            preferred_element_type=jnp.float32)

    @pl.when(e == pl.num_programs(2) - 1)
    def _():
        o_ref[...] = jnp.maximum(acc_ref[...], 0.0).astype(o_ref.dtype)


def _final_linear_kernel(h_ref, w_ref, b_ref, o_ref):
    acc = jnp.dot(h_ref[...], w_ref[...], preferred_element_type=jnp.float32)
    o_ref[...] = acc + b_ref[...]


# ---------------------------------------------------------------------------
# pallas_call wrappers
# ---------------------------------------------------------------------------
def pallas_input_proj(x_all, w_all, b_all):
    nt, n_pad, din = x_all.shape
    h1 = w_all.shape[2]
    tb = _tile_for(n_pad)
    flops = 2 * nt * n_pad * din * h1
    bytes_acc = (x_all.size + w_all.size + nt * n_pad * h1) * 2 + b_all.size * 4
    return pl.pallas_call(
        _input_proj_kernel,
        out_shape=jax.ShapeDtypeStruct((nt, n_pad, h1), jnp.bfloat16),
        grid_spec=pltpu.PrefetchScalarGridSpec(
            num_scalar_prefetch=0,
            grid=(nt, n_pad // tb),
            in_specs=[
                pl.BlockSpec((None, tb, din), lambda t, i: (t, i, 0)),
                pl.BlockSpec((None, din, h1), lambda t, i: (t, 0, 0)),
                pl.BlockSpec((None, 1, h1), lambda t, i: (t, 0, 0)),
            ],
            out_specs=pl.BlockSpec((None, tb, h1), lambda t, i: (t, i, 0)),
        ),
        compiler_params=pltpu.CompilerParams(
            dimension_semantics=("parallel", "parallel"),
            vmem_limit_bytes=VMEM_LIMIT),
        cost_estimate=pl.CostEstimate(
            flops=flops, transcendentals=0, bytes_accessed=bytes_acc),
    )(x_all, w_all, b_all)


def pallas_hetero_sage(srcmap, adj_all, h_all, wl_all, wr_sum, b_sum):
    nt, epd, n_pad, ns_pad = adj_all.shape
    h_in = h_all.shape[2]
    h_out = wl_all.shape[3]
    tb = _tile_for(n_pad)
    flops = (nt * epd * (2 * n_pad * ns_pad * h_in + 2 * n_pad * h_in * h_out)
             + nt * 2 * n_pad * h_in * h_out)
    bytes_acc = ((adj_all.size + 2 * h_all.size + wl_all.size + wr_sum.size
                  + nt * n_pad * h_out) * 2 + b_sum.size * 4)
    return pl.pallas_call(
        _hetero_sage_kernel,
        out_shape=jax.ShapeDtypeStruct((nt, n_pad, h_out), jnp.bfloat16),
        grid_spec=pltpu.PrefetchScalarGridSpec(
            num_scalar_prefetch=1,
            grid=(nt, n_pad // tb, epd),
            in_specs=[
                # adjacency for (dst d, edge slot e)
                pl.BlockSpec((None, None, tb, ns_pad),
                             lambda d, i, e, sm: (d, e, i, 0)),
                # source features: node type selected via scalar-prefetch map
                pl.BlockSpec((None, ns_pad, h_in),
                             lambda d, i, e, sm: (sm[d * epd + e], 0, 0)),
                # destination features (for the folded lin_r term)
                pl.BlockSpec((None, tb, h_in),
                             lambda d, i, e, sm: (d, i, 0)),
                # per-(dst, edge) lin_l weight
                pl.BlockSpec((None, None, h_in, h_out),
                             lambda d, i, e, sm: (d, e, 0, 0)),
                # sum_e Wr_e per dst
                pl.BlockSpec((None, h_in, h_out),
                             lambda d, i, e, sm: (d, 0, 0)),
                # sum_e b_e per dst
                pl.BlockSpec((None, 1, h_out),
                             lambda d, i, e, sm: (d, 0, 0)),
            ],
            out_specs=pl.BlockSpec((None, tb, h_out),
                                   lambda d, i, e, sm: (d, i, 0)),
            scratch_shapes=[pltpu.VMEM((tb, h_out), jnp.float32)],
        ),
        compiler_params=pltpu.CompilerParams(
            dimension_semantics=("parallel", "parallel", "arbitrary"),
            vmem_limit_bytes=VMEM_LIMIT),
        cost_estimate=pl.CostEstimate(
            flops=flops, transcendentals=0, bytes_accessed=bytes_acc),
    )(srcmap, adj_all, h_all, h_all, wl_all, wr_sum, b_sum)


def pallas_final_linear(h_all, w_out, b_out):
    nt, n_pad, h_in = h_all.shape
    out_p = w_out.shape[1]
    tb = _tile_for(n_pad)
    flops = 2 * n_pad * h_in * out_p
    bytes_acc = (n_pad * h_in + w_out.size) * 2 + (n_pad * out_p + b_out.size) * 4
    return pl.pallas_call(
        _final_linear_kernel,
        out_shape=jax.ShapeDtypeStruct((n_pad, out_p), jnp.float32),
        grid_spec=pltpu.PrefetchScalarGridSpec(
            num_scalar_prefetch=0,
            grid=(n_pad // tb,),
            in_specs=[
                pl.BlockSpec((None, tb, h_in), lambda i: (SUPER_IDX, i, 0)),
                pl.BlockSpec((h_in, out_p), lambda i: (0, 0)),
                pl.BlockSpec((1, out_p), lambda i: (0, 0)),
            ],
            out_specs=pl.BlockSpec((tb, out_p), lambda i: (i, 0)),
        ),
        compiler_params=pltpu.CompilerParams(
            dimension_semantics=("parallel",),
            vmem_limit_bytes=VMEM_LIMIT),
        cost_estimate=pl.CostEstimate(
            flops=flops, transcendentals=0, bytes_accessed=bytes_acc),
    )(h_all, w_out, b_out)


# ---------------------------------------------------------------------------
# Parameters (torch-layout init) + one-time layout prep (hoisted transposes,
# padding, bf16 casts, lin_r / bias folding across edge types)
# ---------------------------------------------------------------------------
def init_params(key, hidden_channels, out_channels):
    """Raw params in the PyTorch layout: W [out,in], b [out]."""
    def linear(k, fan_in, fan_out):
        kw, kb = jax.random.split(k)
        bound = 1.0 / math.sqrt(fan_in)
        w = jax.random.uniform(kw, (fan_out, fan_in), jnp.float32, -bound, bound)
        b = jax.random.uniform(kb, (fan_out,), jnp.float32, -bound, bound)
        return w, b

    n_keys = len(NODE_TYPES) + 1 + (len(hidden_channels) - 1) * len(EDGE_TYPES) * 2
    keys = jax.random.split(key, n_keys)
    ki = 0
    params = {"lin_dict": {}, "convs": [], "lin": None}
    for t in NODE_TYPES:
        params["lin_dict"][t] = linear(keys[ki], BERT_DIM, hidden_channels[0])
        ki += 1
    for li in range(1, len(hidden_channels)):
        conv = {}
        for et in EDGE_TYPES:
            wl, b = linear(keys[ki], hidden_channels[li - 1], hidden_channels[li]); ki += 1
            wr, _ = linear(keys[ki], hidden_channels[li - 1], hidden_channels[li]); ki += 1
            conv[et] = (wl, wr, b)  # SAGEConv: lin_l(mean-neigh)+bias, lin_r(root) no bias
        params["convs"].append(conv)
    params["lin"] = linear(keys[ki], hidden_channels[-1], out_channels)
    return params


def prepare_params(params):
    def prep_wb(w, b):
        dout, din = w.shape
        dip, dop = _pad_to(din, LANE), _pad_to(dout, LANE)
        w_p = _pad2(w.T, dip, dop, jnp.bfloat16)
        b_p = jnp.zeros((1, dop), jnp.float32).at[0, :dout].set(b)
        return w_p, b_p

    w_in, b_in = [], []
    for t in NODE_TYPES:
        w_p, b_p = prep_wb(*params["lin_dict"][t])
        w_in.append(w_p); b_in.append(b_p)

    convs = []
    for conv in params["convs"]:
        wl_list, wr_list, b_list = [], [], []
        for dst in NODE_TYPES:
            wl_e, wr_acc, b_acc = [], None, None
            for et in DST_EDGES[dst]:
                wl, wr, b = conv[et]
                wl_p, _ = prep_wb(wl, jnp.zeros((wl.shape[0],), jnp.float32))
                wl_e.append(wl_p)
                wr_acc = wr if wr_acc is None else wr_acc + wr   # fold lin_r
                b_acc = b if b_acc is None else b_acc + b        # fold bias
            wr_p, b_p = prep_wb(wr_acc, b_acc)
            wl_list.append(jnp.stack(wl_e))      # [E, Hin_p, Hout_p]
            wr_list.append(wr_p)
            b_list.append(b_p)
        convs.append((jnp.stack(wl_list), jnp.stack(wr_list), jnp.stack(b_list)))

    w_out, b_out = prep_wb(*params["lin"])
    return {"w_in": jnp.stack(w_in), "b_in": jnp.stack(b_in),
            "convs": convs, "w_out": w_out, "b_out": b_out}


def prepare_graph(x_dict, edge_index_dict):
    """Pad node features to a common row count and build dense row-normalized
    (mean) adjacencies stacked per (dst, edge-slot), padded & bf16 for MXU."""
    n_real = {t: x_dict[t].shape[0] for t in NODE_TYPES}
    n_pad = max(_row_tiling(n) for n in n_real.values())
    x_all = jnp.stack([
        _pad2(x_dict[t], n_pad, _pad_to(x_dict[t].shape[1], LANE), jnp.bfloat16)
        for t in NODE_TYPES])

    adj_blocks, srcmap = [], []
    for dst in NODE_TYPES:
        per_e = []
        for (src, d) in DST_EDGES[dst]:
            ei = edge_index_dict[(src, d)]
            a = jnp.zeros((n_real[d], n_real[src]), jnp.float32)
            a = a.at[ei[1], ei[0]].add(1.0)          # count parallel edges (PyG mean)
            deg = jnp.sum(a, axis=1, keepdims=True)
            a = a / jnp.maximum(deg, 1.0)
            per_e.append(_pad2(a, n_pad, n_pad, jnp.bfloat16))
            srcmap.append(NODE_TYPES.index(src))
        adj_blocks.append(jnp.stack(per_e))
    adj_all = jnp.stack(adj_blocks)                  # [3, E, n_pad, n_pad]
    srcmap = jnp.asarray(srcmap, jnp.int32)          # [3*E]
    return x_all, adj_all, srcmap, n_real


# ---------------------------------------------------------------------------
# Forward pass (3 pallas_calls total for the demo config)
# ---------------------------------------------------------------------------
def hetero_gnn_forward(prepped, x_all, adj_all, srcmap):
    # 1) per-node-type input projection + ReLU (one fused kernel)
    h = pallas_input_proj(x_all, prepped["w_in"], prepped["b_in"])
    # 2) HeteroConv(SAGEConv, aggr='sum') + ReLU per layer (one fused kernel
    #    each; dropout_prob=0.0 in the reference module -> identity)
    for wl_all, wr_sum, b_sum in prepped["convs"]:
        h = pallas_hetero_sage(srcmap, adj_all, h, wl_all, wr_sum, b_sum)
    # 3) final Linear on the super-node features (padded; caller slices)
    return pallas_final_linear(h, prepped["w_out"], prepped["b_out"])


# ---------------------------------------------------------------------------
# Pure-JAX reference (mirrors the bf16 operand quantization exactly)
# ---------------------------------------------------------------------------
def reference_forward(prepped, x_all, adj_all, n_super, out_channels):
    h = []
    for t in range(len(NODE_TYPES)):
        y = (jnp.dot(x_all[t], prepped["w_in"][t], preferred_element_type=jnp.float32)
             + prepped["b_in"][t])
        h.append(jnp.maximum(y, 0.0).astype(jnp.bfloat16))
    for wl_all, wr_sum, b_sum in prepped["convs"]:
        hn = []
        for d, dst in enumerate(NODE_TYPES):
            acc = (jnp.dot(h[d], wr_sum[d], preferred_element_type=jnp.float32)
                   + b_sum[d])
            for e, (src, _) in enumerate(DST_EDGES[dst]):
                s = NODE_TYPES.index(src)
                agg = jnp.dot(adj_all[d, e], h[s], preferred_element_type=jnp.float32)
                acc = acc + jnp.dot(agg.astype(jnp.bfloat16), wl_all[d, e],
                                    preferred_element_type=jnp.float32)
            hn.append(jnp.maximum(acc, 0.0).astype(jnp.bfloat16))
        h = hn
    out = (jnp.dot(h[SUPER_IDX], prepped["w_out"], preferred_element_type=jnp.float32)
           + prepped["b_out"])
    return out[:n_super, :out_channels]


if __name__ == "__main__":
    key = jax.random.PRNGKey(0)
    k_feat, k_edge, k_par = jax.random.split(key, 3)

    hidden_channels = [32, 32]   # input projection + one HeteroConv layer
    out_channels = 3

    # Small deterministic hetero-graph.  The frozen SBERT/BERT encoder is not
    # a Pallas kernel; we start from the 768-d embeddings it would produce.
    n_nodes = {"claim": 5, "premise": 7, "super_node": 2}
    fkeys = jax.random.split(k_feat, len(NODE_TYPES))
    x_dict = {t: jax.random.normal(fk, (n_nodes[t], BERT_DIM), jnp.float32)
              for t, fk in zip(NODE_TYPES, fkeys)}

    n_edges = {
        ("claim", "claim"): 6,
        ("claim", "premise"): 8,
        ("premise", "claim"): 8,
        ("premise", "premise"): 10,
        ("premise", "super_node"): 7,
        ("claim", "super_node"): 5,
    }
    ekeys = jax.random.split(k_edge, len(EDGE_TYPES))
    edge_index_dict = {}
    for (src, dst), ek in zip(EDGE_TYPES, ekeys):
        ks, kd = jax.random.split(ek)
        e = n_edges[(src, dst)]
        edge_index_dict[(src, dst)] = jnp.stack(
            [jax.random.randint(ks, (e,), 0, n_nodes[src]),
             jax.random.randint(kd, (e,), 0, n_nodes[dst])], axis=0)

    # One-time parameter / graph layout prep (hoisted out of the call path).
    params = init_params(k_par, hidden_channels, out_channels)
    prepped = prepare_params(params)
    x_all, adj_all, srcmap, n_real = prepare_graph(x_dict, edge_index_dict)

    fwd = jax.jit(hetero_gnn_forward)
    out_padded = fwd(prepped, x_all, adj_all, srcmap)
    out = out_padded[: n_real["super_node"], :out_channels]
    jax.block_until_ready(out)

    ref = reference_forward(prepped, x_all, adj_all,
                            n_real["super_node"], out_channels)
    assert out.shape == (n_nodes["super_node"], out_channels)
    assert jnp.allclose(out.astype(jnp.float32), ref.astype(jnp.float32),
                        atol=5e-2, rtol=5e-2), "mismatch vs reference"

    print("KERNEL_OK")
</pallas_src>

<mosaic_0001>
module attributes {stable_mosaic.version = 11 : i64} {
  func.func @_final_linear_kernel(%arg0: i32, %arg1: memref<1x8x128xbf16, #tpu.memory_space<vmem>>, %arg2: memref<128x128xbf16, #tpu.memory_space<vmem>>, %arg3: memref<1x128xf32, #tpu.memory_space<vmem>>, %arg4: memref<8x128xf32, #tpu.memory_space<vmem>>) attributes {dimension_semantics = [#tpu.dimension_semantics<parallel>], iteration_bounds = array<i64: 1>, scalar_prefetch = 0 : i64, scratch_operands = 0 : i64, tpu.core_type = #tpu.core_type<tc>, window_params = [{transform_indices = @transform_0, window_bounds = array<i64: 1, 8, 128>}, {pipeline_mode = #tpu.pipeline_mode<synchronous>, transform_indices = @transform_1, window_bounds = array<i64: 128, 128>}, {pipeline_mode = #tpu.pipeline_mode<synchronous>, transform_indices = @transform_2, window_bounds = array<i64: 1, 128>}, {transform_indices = @transform_3, window_bounds = array<i64: 8, 128>}]} {
    %c0 = arith.constant 0 : index
    %c0_0 = arith.constant 0 : index
    %c0_1 = arith.constant 0 : index
    %0 = vector.load %arg1[%c0, %c0_0, %c0_1] : memref<1x8x128xbf16, #tpu.memory_space<vmem>>, vector<1x8x128xbf16>
    %1 = vector.shape_cast %0 : vector<1x8x128xbf16> to vector<8x128xbf16>
    %c0_2 = arith.constant 0 : index
    %c0_3 = arith.constant 0 : index
    %2 = vector.load %arg2[%c0_2, %c0_3] : memref<128x128xbf16, #tpu.memory_space<vmem>>, vector<128x128xbf16>
    %cst = arith.constant dense<0.000000e+00> : vector<8x128xf32>
    %3 = tpu.matmul %1, %2, %cst {dimension_numbers = #tpu.dot_dimension_numbers<[1], [0], [0], [1], [0, 0, 1, 1], [], []>} : vector<8x128xbf16>, vector<128x128xbf16>, vector<8x128xf32> -> vector<8x128xf32>
    %c0_4 = arith.constant 0 : index
    %c0_5 = arith.constant 0 : index
    %4 = vector.load %arg3[%c0_4, %c0_5] : memref<1x128xf32, #tpu.memory_space<vmem>>, vector<1x128xf32>
    %5 = vector.broadcast %4 : vector<1x128xf32> to vector<8x128xf32>
    %6 = arith.addf %3, %5 : vector<8x128xf32>
    %c0_6 = arith.constant 0 : index
    %c0_7 = arith.constant 0 : index
    %7 = vector.load %arg4[%c0_6, %c0_7] : memref<8x128xf32, #tpu.memory_space<vmem>>, vector<8x128xf32>
    tpu.vector_store %arg4[%c0_6, %c0_7], %6 {strides = array<i32>} : memref<8x128xf32, #tpu.memory_space<vmem>>, vector<8x128xf32>,
    return
  }
  func.func @transform_0(%arg0: i32) -> (i32, i32, i32) {
    %c2_i32 = arith.constant 2 : i32
    %c0_i32 = arith.constant 0 : i32
    %c0_i32_0 = arith.constant 0 : i32
    return %c2_i32, %arg0, %c0_i32 : i32, i32, i32
  }
  func.func @transform_1(%arg0: i32) -> (i32, i32) {
    %c0_i32 = arith.constant 0 : i32
    %c0_i32_0 = arith.constant 0 : i32
    %c0_i32_1 = arith.constant 0 : i32
    return %c0_i32, %c0_i32_0 : i32, i32
  }
  func.func @transform_2(%arg0: i32) -> (i32, i32) {
    %c0_i32 = arith.constant 0 : i32
    %c0_i32_0 = arith.constant 0 : i32
    %c0_i32_1 = arith.constant 0 : i32
    return %c0_i32, %c0_i32_0 : i32, i32
  }
  func.func @transform_3(%arg0: i32) -> (i32, i32) {
    %c0_i32 = arith.constant 0 : i32
    %c0_i32_0 = arith.constant 0 : i32
    return %arg0, %c0_i32 : i32, i32
  }
}

module attributes {stable_mosaic.version = 11 : i64} {
  func.func @_input_proj_kernel(%arg0: i32, %arg1: i32, %arg2: memref<1x8x768xbf16, #tpu.memory_space<vmem>>, %arg3: memref<1x768x128xbf16, #tpu.memory_space<vmem>>, %arg4: memref<1x1x128xf32, #tpu.memory_space<vmem>>, %arg5: memref<1x8x128xbf16, #tpu.memory_space<vmem>>) attributes {dimension_semantics = [#tpu.dimension_semantics<parallel>, #tpu.dimension_semantics<parallel>], iteration_bounds = array<i64: 3, 1>, scalar_prefetch = 0 : i64, scratch_operands = 0 : i64, tpu.core_type = #tpu.core_type<tc>, window_params = [{transform_indices = @transform_0, window_bounds = array<i64: 1, 8, 768>}, {transform_indices = @transform_1, window_bounds = array<i64: 1, 768, 128>}, {transform_indices = @transform_2, window_bounds = array<i64: 1, 1, 128>}, {transform_indices = @transform_3, window_bounds = array<i64: 1, 8, 128>}]} {
    %c0 = arith.constant 0 : index
    %c0_0 = arith.constant 0 : index
    %c0_1 = arith.constant 0 : index
    %0 = vector.load %arg2[%c0, %c0_0, %c0_1] : memref<1x8x768xbf16, #tpu.memory_space<vmem>>, vector<1x8x768xbf16>
    %1 = vector.shape_cast %0 : vector<1x8x768xbf16> to vector<8x768xbf16>
    %c0_2 = arith.constant 0 : index
    %c0_3 = arith.constant 0 : index
    %c0_4 = arith.constant 0 : index
    %2 = vector.load %arg3[%c0_2, %c0_3, %c0_4] : memref<1x768x128xbf16, #tpu.memory_space<vmem>>, vector<1x768x128xbf16>
    %3 = vector.shape_cast %2 : vector<1x768x128xbf16> to vector<768x128xbf16>
    %cst = arith.constant dense<0.000000e+00> : vector<8x128xf32>
    %4 = tpu.matmul %1, %3, %cst {dimension_numbers = #tpu.dot_dimension_numbers<[1], [0], [0], [1], [0, 0, 1, 1], [], []>} : vector<8x768xbf16>, vector<768x128xbf16>, vector<8x128xf32> -> vector<8x128xf32>
    %c0_5 = arith.constant 0 : index
    %c0_6 = arith.constant 0 : index
    %c0_7 = arith.constant 0 : index
    %5 = vector.load %arg4[%c0_5, %c0_6, %c0_7] : memref<1x1x128xf32, #tpu.memory_space<vmem>>, vector<1x1x128xf32>
    %6 = vector.shape_cast %5 : vector<1x1x128xf32> to vector<1x128xf32>
    %7 = vector.broadcast %6 : vector<1x128xf32> to vector<8x128xf32>
    %8 = arith.addf %4, %7 : vector<8x128xf32>
    %cst_8 = arith.constant 0.000000e+00 : f32
    %9 = vector.broadcast %cst_8 : f32 to vector<8x128xf32>
    %10 = arith.maximumf %8, %9 : vector<8x128xf32>
    %11 = arith.truncf %10 : vector<8x128xf32> to vector<8x128xbf16>
    %c0_9 = arith.constant 0 : index
    %c0_10 = arith.constant 0 : index
    %c0_11 = arith.constant 0 : index
    %12 = vector.load %arg5[%c0_9, %c0_10, %c0_11] : memref<1x8x128xbf16, #tpu.memory_space<vmem>>, vector<1x8x128xbf16>
    %13 = vector.shape_cast %12 : vector<1x8x128xbf16> to vector<8x128xbf16>
    %14 = vector.shape_cast %11 : vector<8x128xbf16> to vector<1x8x128xbf16>
    tpu.vector_store %arg5[%c0_9, %c0_10, %c0_11], %14 {strides = array<i32>} : memref<1x8x128xbf16, #tpu.memory_space<vmem>>, vector<1x8x128xbf16>,
    return
  }
  func.func @transform_0(%arg0: i32, %arg1: i32) -> (i32, i32, i32) {
    %c0_i32 = arith.constant 0 : i32
    %c0_i32_0 = arith.constant 0 : i32
    return %arg0, %arg1, %c0_i32 : i32, i32, i32
  }
  func.func @transform_1(%arg0: i32, %arg1: i32) -> (i32, i32, i32) {
    %c0_i32 = arith.constant 0 : i32
    %c0_i32_0 = arith.constant 0 : i32
    %c0_i32_1 = arith.constant 0 : i32
    return %arg0, %c0_i32, %c0_i32_0 : i32, i32, i32
  }
  func.func @transform_2(%arg0: i32, %arg1: i32) -> (i32, i32, i32) {
    %c0_i32 = arith.constant 0 : i32
    %c0_i32_0 = arith.constant 0 : i32
    %c0_i32_1 = arith.constant 0 : i32
    return %arg0, %c0_i32, %c0_i32_0 : i32, i32, i32
  }
  func.func @transform_3(%arg0: i32, %arg1: i32) -> (i32, i32, i32) {
    %c0_i32 = arith.constant 0 : i32
    %c0_i32_0 = arith.constant 0 : i32
    return %arg0, %arg1, %c0_i32 : i32, i32, i32
  }
}

module attributes {stable_mosaic.version = 11 : i64} {
  func.func @_hetero_sage_kernel(%arg0: i32, %arg1: i32, %arg2: i32, %arg3: memref<6xi32, #tpu.memory_space<smem>>, %arg4: memref<1x1x8x8xbf16, #tpu.memory_space<vmem>>, %arg5: memref<1x8x128xbf16, #tpu.memory_space<vmem>>, %arg6: memref<1x8x128xbf16, #tpu.memory_space<vmem>>, %arg7: memref<1x1x128x128xbf16, #tpu.memory_space<vmem>>, %arg8: memref<1x128x128xbf16, #tpu.memory_space<vmem>>, %arg9: memref<1x1x128xf32, #tpu.memory_space<vmem>>, %arg10: memref<1x8x128xbf16, #tpu.memory_space<vmem>>, %arg11: memref<8x128xf32, #tpu.memory_space<vmem>>) attributes {dimension_semantics = [#tpu.dimension_semantics<parallel>, #tpu.dimension_semantics<parallel>, #tpu.dimension_semantics<arbitrary>], iteration_bounds = array<i64: 3, 1, 2>, scalar_prefetch = 1 : i64, scratch_operands = 1 : i64, tpu.core_type = #tpu.core_type<tc>, window_params = [{transform_indices = @transform_0, window_bounds = array<i64: 1, 1, 8, 8>}, {transform_indices = @transform_1, window_bounds = array<i64: 1, 8, 128>}, {transform_indices = @transform_2, window_bounds = array<i64: 1, 8, 128>}, {transform_indices = @transform_3, window_bounds = array<i64: 1, 1, 128, 128>}, {transform_indices = @transform_4, window_bounds = array<i64: 1, 128, 128>}, {transform_indices = @transform_5, window_bounds = array<i64: 1, 1, 128>}, {transform_indices = @transform_6, window_bounds = array<i64: 1, 8, 128>}]} {
    %c0_i32 = arith.constant 0 : i32
    %0 = arith.cmpi eq, %arg2, %c0_i32 : i32
    %1 = arith.extui %0 : i1 to i32
    %c0_i32_0 = arith.constant 0 : i32
    %2 = arith.cmpi ne, %1, %c0_i32_0 : i32
    scf.if %2 {
      %c0_17 = arith.constant 0 : index
      %c0_18 = arith.constant 0 : index
      %c0_19 = arith.constant 0 : index
      %18 = vector.load %arg6[%c0_17, %c0_18, %c0_19] : memref<1x8x128xbf16, #tpu.memory_space<vmem>>, vector<1x8x128xbf16>
      %19 = vector.shape_cast %18 : vector<1x8x128xbf16> to vector<8x128xbf16>
      %c0_20 = arith.constant 0 : index
      %c0_21 = arith.constant 0 : index
      %c0_22 = arith.constant 0 : index
      %20 = vector.load %arg8[%c0_20, %c0_21, %c0_22] : memref<1x128x128xbf16, #tpu.memory_space<vmem>>, vector<1x128x128xbf16>
      %21 = vector.shape_cast %20 : vector<1x128x128xbf16> to vector<128x128xbf16>
      %cst_23 = arith.constant dense<0.000000e+00> : vector<8x128xf32>
      %22 = tpu.matmul %19, %21, %cst_23 {dimension_numbers = #tpu.dot_dimension_numbers<[1], [0], [0], [1], [0, 0, 1, 1], [], []>} : vector<8x128xbf16>, vector<128x128xbf16>, vector<8x128xf32> -> vector<8x128xf32>
      %c0_24 = arith.constant 0 : index
      %c0_25 = arith.constant 0 : index
      %c0_26 = arith.constant 0 : index
      %23 = vector.load %arg9[%c0_24, %c0_25, %c0_26] : memref<1x1x128xf32, #tpu.memory_space<vmem>>, vector<1x1x128xf32>
      %24 = vector.shape_cast %23 : vector<1x1x128xf32> to vector<1x128xf32>
      %25 = vector.broadcast %24 : vector<1x128xf32> to vector<8x128xf32>
      %26 = arith.addf %22, %25 : vector<8x128xf32>
      %c0_27 = arith.constant 0 : index
      %c0_28 = arith.constant 0 : index
      %27 = vector.load %arg11[%c0_27, %c0_28] : memref<8x128xf32, #tpu.memory_space<vmem>>, vector<8x128xf32>
      tpu.vector_store %arg11[%c0_27, %c0_28], %26 {strides = array<i32>} : memref<8x128xf32, #tpu.memory_space<vmem>>, vector<8x128xf32>,
    } else {
    }
    %c0 = arith.constant 0 : index
    %c0_1 = arith.constant 0 : index
    %c0_2 = arith.constant 0 : index
    %c0_3 = arith.constant 0 : index
    %3 = vector.load %arg4[%c0, %c0_1, %c0_2, %c0_3] : memref<1x1x8x8xbf16, #tpu.memory_space<vmem>>, vector<1x1x8x8xbf16>
    %4 = vector.shape_cast %3 : vector<1x1x8x8xbf16> to vector<8x8xbf16>
    %c0_4 = arith.constant 0 : index
    %c0_5 = arith.constant 0 : index
    %c0_6 = arith.constant 0 : index
    %5 = vector.load %arg5[%c0_4, %c0_5, %c0_6] : memref<1x8x128xbf16, #tpu.memory_space<vmem>>, vector<1x8x128xbf16>
    %6 = vector.shape_cast %5 : vector<1x8x128xbf16> to vector<8x128xbf16>
    %cst = arith.constant dense<0.000000e+00> : vector<8x128xf32>
    %7 = tpu.matmul %4, %6, %cst {dimension_numbers = #tpu.dot_dimension_numbers<[1], [0], [0], [1], [0, 0, 1, 1], [], []>} : vector<8x8xbf16>, vector<8x128xbf16>, vector<8x128xf32> -> vector<8x128xf32>
    %c0_7 = arith.constant 0 : index
    %c0_8 = arith.constant 0 : index
    %8 = vector.load %arg11[%c0_7, %c0_8] : memref<8x128xf32, #tpu.memory_space<vmem>>, vector<8x128xf32>
    %9 = arith.truncf %7 : vector<8x128xf32> to vector<8x128xbf16>
    %c0_9 = arith.constant 0 : index
    %c0_10 = arith.constant 0 : index
    %c0_11 = arith.constant 0 : index
    %c0_12 = arith.constant 0 : index
    %10 = vector.load %arg7[%c0_9, %c0_10, %c0_11, %c0_12] : memref<1x1x128x128xbf16, #tpu.memory_space<vmem>>, vector<1x1x128x128xbf16>
    %11 = vector.shape_cast %10 : vector<1x1x128x128xbf16> to vector<128x128xbf16>
    %cst_13 = arith.constant dense<0.000000e+00> : vector<8x128xf32>
    %12 = tpu.matmul %9, %11, %cst_13 {dimension_numbers = #tpu.dot_dimension_numbers<[1], [0], [0], [1], [0, 0, 1, 1], [], []>} : vector<8x128xbf16>, vector<128x128xbf16>, vector<8x128xf32> -> vector<8x128xf32>
    %13 = arith.addf %8, %12 : vector<8x128xf32>
    %c0_14 = arith.constant 0 : index
    %c0_15 = arith.constant 0 : index
    %14 = vector.load %arg11[%c0_14, %c0_15] : memref<8x128xf32, #tpu.memory_space<vmem>>, vector<8x128xf32>
    tpu.vector_store %arg11[%c0_14, %c0_15], %13 {strides = array<i32>} : memref<8x128xf32, #tpu.memory_space<vmem>>, vector<8x128xf32>,
    %c1_i32 = arith.constant 1 : i32
    %15 = arith.cmpi eq, %arg2, %c1_i32 : i32
    %16 = arith.extui %15 : i1 to i32
    %c0_i32_16 = arith.constant 0 : i32
    %17 = arith.cmpi ne, %16, %c0_i32_16 : i32
    scf.if %17 {
      %c0_17 = arith.constant 0 : index
      %c0_18 = arith.constant 0 : index
      %18 = vector.load %arg11[%c0_17, %c0_18] : memref<8x128xf32, #tpu.memory_space<vmem>>, vector<8x128xf32>
      %cst_19 = arith.constant 0.000000e+00 : f32
      %19 = vector.broadcast %cst_19 : f32 to vector<8x128xf32>
      %20 = arith.maximumf %18, %19 : vector<8x128xf32>
      %21 = arith.truncf %20 : vector<8x128xf32> to vector<8x128xbf16>
      %c0_20 = arith.constant 0 : index
      %c0_21 = arith.constant 0 : index
      %c0_22 = arith.constant 0 : index
      %22 = vector.load %arg10[%c0_20, %c0_21, %c0_22] : memref<1x8x128xbf16, #tpu.memory_space<vmem>>, vector<1x8x128xbf16>
      %23 = vector.shape_cast %22 : vector<1x8x128xbf16> to vector<8x128xbf16>
      %24 = vector.shape_cast %21 : vector<8x128xbf16> to vector<1x8x128xbf16>
      tpu.vector_store %arg10[%c0_20, %c0_21, %c0_22], %24 {strides = array<i32>} : memref<1x8x128xbf16, #tpu.memory_space<vmem>>, vector<1x8x128xbf16>,
    } else {
    }
    return
  }
  func.func @transform_0(%arg0: i32, %arg1: i32, %arg2: i32, %arg3: memref<6xi32, #tpu.memory_space<smem>>) -> (i32, i32, i32, i32) {
    %c0_i32 = arith.constant 0 : i32
    %c0_i32_0 = arith.constant 0 : i32
    return %arg0, %arg2, %arg1, %c0_i32 : i32, i32, i32, i32
  }
  func.func @transform_1(%arg0: i32, %arg1: i32, %arg2: i32, %arg3: memref<6xi32, #tpu.memory_space<smem>>) -> (i32, i32, i32) {
    %c2_i32 = arith.constant 2 : i32
    %0 = arith.muli %arg0, %c2_i32 : i32
    %1 = arith.addi %0, %arg2 : i32
    %2 = arith.index_cast %1 : i32 to index
    %3 = memref.load %arg3[%2] : memref<6xi32, #tpu.memory_space<smem>>
    %c0_i32 = arith.constant 0 : i32
    %c0_i32_0 = arith.constant 0 : i32
    %c0_i32_1 = arith.constant 0 : i32
    return %3, %c0_i32, %c0_i32_0 : i32, i32, i32
  }
  func.func @transform_2(%arg0: i32, %arg1: i32, %arg2: i32, %arg3: memref<6xi32, #tpu.memory_space<smem>>) -> (i32, i32, i32) {
    %c0_i32 = arith.constant 0 : i32
    %c0_i32_0 = arith.constant 0 : i32
    return %arg0, %arg1, %c0_i32 : i32, i32, i32
  }
  func.func @transform_3(%arg0: i32, %arg1: i32, %arg2: i32, %arg3: memref<6xi32, #tpu.memory_space<smem>>) -> (i32, i32, i32, i32) {
    %c0_i32 = arith.constant 0 : i32
    %c0_i32_0 = arith.constant 0 : i32
    %c0_i32_1 = arith.constant 0 : i32
    return %arg0, %arg2, %c0_i32, %c0_i32_0 : i32, i32, i32, i32
  }
  func.func @transform_4(%arg0: i32, %arg1: i32, %arg2: i32, %arg3: memref<6xi32, #tpu.memory_space<smem>>) -> (i32, i32, i32) {
    %c0_i32 = arith.constant 0 : i32
    %c0_i32_0 = arith.constant 0 : i32
    %c0_i32_1 = arith.constant 0 : i32
    return %arg0, %c0_i32, %c0_i32_0 : i32, i32, i32
  }
  func.func @transform_5(%arg0: i32, %arg1: i32, %arg2: i32, %arg3: memref<6xi32, #tpu.memory_space<smem>>) -> (i32, i32, i32) {
    %c0_i32 = arith.constant 0 : i32
    %c0_i32_0 = arith.constant 0 : i32
    %c0_i32_1 = arith.constant 0 : i32
    return %arg0, %c0_i32, %c0_i32_0 : i32, i32, i32
  }
  func.func @transform_6(%arg0: i32, %arg1: i32, %arg2: i32, %arg3: memref<6xi32, #tpu.memory_space<smem>>) -> (i32, i32, i32) {
    %c0_i32 = arith.constant 0 : i32
    %c0_i32_0 = arith.constant 0 : i32
    return %arg0, %arg1, %c0_i32 : i32, i32, i32
  }
}

</mosaic_0001>

<bundles_post_ra>
// kernel: hetero_gnn_forward.5
= control target key start
LH: loop header
LB: loop body
LE: loop exit
PB: predicated region body
PF: predicated region fallthrough
CT: control target
= control target key end

     0   :  { %v220_v1 = vmov 0.0   ;;  %vm221_vm0 = vmmov 0   ;;  %s285_s0 = inlined_call_operand.vmem [shape: bf16[3,8,128], index: 0, kind: input, shape index: {}]   ;;  %s286_s1 = inlined_call_operand.vmem [shape: bf16[128,128], index: 1, kind: input, shape index: {}]   ;;  %s287_s2 = inlined_call_operand.vmem [shape: f32[1,128], index: 2, kind: input, shape index: {}]   ;;  %s288_s3 = inlined_call_operand.hbm [shape: f32[8,128], index: 3, kind: output, shape index: {}]  }
   0x1   :  { %v188_v0 = vld [vmem:[%s286_s1] sm:$0xff]   ;;  %165 = vmatprep.subr.bf16.mxu0 %v220_v1  ;;  %v189_v2 = vld [vmem:[%s286_s1 + $0x8] sm:$0xff]   ;;  %181 = vmatprep.mubr.msk.bf16.mxu0 %vm221_vm0, %v220_v1  ;;  %v190_v3 = vld [vmem:[%s286_s1 + $0x10] sm:$0xff]  }
   0x2   :  { %166 = vmatpush3.bf16.msra.mxu0 %v188_v0 }
   0x3   :  { %167 = vmatprep.subr.bf16.mxu0 %v220_v1 }
   0x6   :  { %168 = vmatpush3.bf16.msra.mxu0 %v189_v2 }
   0x7   :  { %169 = vmatprep.subr.bf16.mxu0 %v220_v1 }
   0x8   :  { %8 = vsyncpa [#allocation3], 0  ;;  %v191_v4 = vld [vmem:[%s286_s1 + $0x18] sm:$0xff]   ;;  %v192_v5 = vld [vmem:[%s286_s1 + $0x20] sm:$0xff]   ;;  %s222_s5 = smov [#allocation2]  }
   0x9   :  { %v193_v6 = vld [vmem:[%s286_s1 + $0x28] sm:$0xff]   ;;  %v194_v7 = vld [vmem:[%s286_s1 + $0x30] sm:$0xff]   ;;  %v195_v8 = vld [vmem:[%s286_s1 + $0x38] sm:$0xff]   ;;  %s138_s6 = sshll.u32 %s222_s5, 4  ;;  %s139_s6 = int_to_ptr.vmem [resolvable:$true] %s138_s6 }
   0xa   :  { %170 = vmatpush3.bf16.msra.mxu0 %v190_v3  ;;  %v146_v9 = vld [vmem:[%s285_s0 + $0x8] sm:$0xf]  ;;  %v147_v10 = vld [vmem:[%s287_s2] ss:$0 sm:$0xff]  ;;  %s196_s1 = scalar_lea.vmem %s139_s6, 128  ;;  %p201_p1 = scmp.lt.s32.totalorder %s139_s6, %s139_s6 }
   0xb   :  { %171 = vmatprep.subr.bf16.mxu0 %v220_v1  ;;  %p197_p0 = scmp.ne.s32.totalorder %s139_s6, %s196_s1  ;;  %p202_p2 = scmp.lt.s32.totalorder %s196_s1, %s196_s1 }
   0xd   :  { %p203_p3 = por %p202_p2, %p201_p1 }
   0xe   :  { %172 = vmatpush3.bf16.msra.mxu0 %v191_v4 }
   0xf   :  { %173 = vmatprep.subr.bf16.mxu0 %v220_v1  ;;  %p204_p4 = pnand %p203_p3, %p197_p0 }
  0x12   :  { %174 = vmatpush3.bf16.msra.mxu0 %v192_v5 }
  0x13   :  { %175 = vmatprep.subr.bf16.mxu0 %v220_v1 }
  0x16   :  { %176 = vmatpush3.bf16.msra.mxu0 %v193_v6 }
  0x17   :  { %177 = vmatprep.subr.bf16.mxu0 %v220_v1 }
  0x1a   :  { %178 = vmatpush3.bf16.msra.mxu0 %v194_v7 }
  0x1b   :  { %179 = vmatprep.subr.bf16.mxu0 %v220_v1 }
  0x1e   :  { %180 = vmatpush3.bf16.msra.mxu0 %v195_v8 }
  0x21   :  { %182 = vmatmul.mubr.bf16.vlgmr.msra.gmra.mrb[0].mxu0 %v146_v9 }
  0xf4   :  { %v125_v11 = vpop.f32.mrb[0].mxu0 }
  0xf5   :  { %v126_v12 = vadd.f32 %v147_v10, %v125_v11  ;;  %v183_v13 = vpop.f32.mrb[1].mxu0 }
  0xf6   :  { %v128_v14 = vpop.f32.mrb[2].mxu0 }
  0xf7   :  { %131 = vst [vmem:[#allocation2] sm:$0xff] %v126_v12  ;;  %v184_v15 = vpop.f32.mrb[3].mxu0 }
  0xf8   :  { %207 = shalt.err (!%p204_p4)
}
  0xf9   :  { %s208_s2 = scalar_lea.hbm %s288_s3, 128 }
  0xfa   :  { %p209_p5 = scmp.ne.s32.totalorder %s288_s3, %s208_s2  ;;  %p212_p6 = scmp.lt.u32.totalorder %s208_s2, %s288_s3 }
  0xfc   :  { %p214_p7 = pnand %p212_p6, %p209_p5 }
  0xfe   :  { %217 = shalt.err (!%p214_p7)
}
  0xff   :  { %141 = dma.vmem_to_hbm [thread:$0]  %s139_s6, 128, %s288_s3, [#allocation3]  }
 0x100   :  { %218 = dma.done.wait [#allocation3], 128  }
 0x101   :  { %219 = vsyncadd [#allocation3], 4294967168 }
 0x102   :  { %145 = vsyncpa [#allocation3], 1 }

// kernel: hetero_gnn_forward.4
= control target key start
LH: loop header
LB: loop body
LE: loop exit
PB: predicated region body
PF: predicated region fallthrough
CT: control target
= control target key end

     0   :  { %s1266_s0 = inlined_call_operand.vmem [shape: s32[6], index: 0, kind: input, shape index: {}]   ;;  %s1267_s1 = inlined_call_operand.vmem [shape: bf16[3,2,8,8], index: 1, kind: input, shape index: {}]   ;;  %s1268_s2 = inlined_call_operand.vmem [shape: bf16[3,8,128], index: 2, kind: input, shape index: {}, may-alias: {2,3}]   ;;  %s1269_s3 = inlined_call_operand.vmem [shape: bf16[3,8,128], index: 3, kind: input, shape index: {}, may-alias: {2,3}]   ;;  %s1270_s4 = inlined_call_operand.vmem [shape: bf16[3,2,128,128], index: 4, kind: input, shape index: {}]   ;;  %s1271_s5 = inlined_call_operand.vmem [shape: bf16[3,128,128], index: 5, kind: input, shape index: {}]   ;;  %s1272_s6 = inlined_call_operand.vmem [shape: f32[3,1,128], index: 6, kind: input, shape index: {}]   ;;  %s1273_s7 = inlined_call_operand.vmem [shape: bf16[3,8,128], index: 7, kind: output, shape index: {}]  }
   0x1   :  { %1274 = sst [smem:[#allocation8_spill]] %s1267_s1  ;;  %s12_s26 = sshll.u32 %s1266_s0, 4  ;;  %s13_s26 = int_to_ptr.vmem [resolvable:$true] %s12_s26 }
   0x2   :  { %s1047_s27 = scalar_lea.vmem %s13_s26, 16  ;;  %p1052_p1 = scmp.lt.s32.totalorder %s13_s26, %s13_s26 }
   0x3   :  { %p1048_p0 = scmp.ne.s32.totalorder %s13_s26, %s1047_s27  ;;  %p1053_p2 = scmp.lt.s32.totalorder %s1047_s27, %s1047_s27 }
   0x5   :  { %p1054_p3 = por %p1053_p2, %p1052_p1 }
   0x7   :  { %p1055_p4 = pnand %p1054_p3, %p1048_p0 }
   0x9   :  { %1058 = shalt.err (!%p1055_p4)  }
   0xa   :  { %s1101_s28 = smov [#allocation4]  }
   0xb   :  { %15 = dma.vmem_to_smem %s13_s26, 16, %s1101_s28, [#allocation3] }
   0xc   :  { %1079 = dma.done.wait [#allocation3], 16 }
   0xd   :  { %1080 = vsyncadd [#allocation3], 4294967280 }
   0xe   :  { %17 = sfence }
   0xf   :  { %s1149_s29 = smov 0   ;;  %s1151_s30 = smov 0  }
  0x10   :  { %s1153_s8 = smov 0   ;;  %s1155_s0 = smov 0  }
  0x11   :  { %s1157_s9 = smov 0  }
  0x12 LB: > { %s35_s10 = sadd.s32 1, %s1091_s8  ;;  %s42_s11 = sadd.s32 1, %s1095_s0  ;;  %s1099_s9 = sphi %s1157_s9, %s23_s9   ;;  %s1095_s0 = sphi %s1155_s0, %s1283_s0   ;;  %s1091_s8 = sphi %s1153_s8, %s1282_s8   ;;  %s1087_s30 = sphi %s1151_s30, %s1281_s30   ;;  %s1083_s29 = sphi %s1149_s29, %s1280_s29  }
  0x13   : > { %p36_p5 = scmp.ge.s32.totalorder %s35_s10, 2  ;;  %p885_p6 = scmp.ge.s32.totalorder %s1099_s9, 1 }
  0x14   : > { %p319_p7 = scmp.lt.s32.totalorder %s1099_s9, 7 }
  0x15   : > { %s1285_s10 = smov (%p36_p5, %s35_s10), 0  ;;  %s1287_s11 = smov (!%p36_p5, %s42_s11), %s1095_s0 }
  0x16   : > { %1275 = sst [smem:[#allocation6_spill]] %s1285_s10  ;;  %p320_p8 = pnand %p885_p6, %p319_p7 }
  0x17   : > { %p44_p9 = scmp.ge.s32.totalorder %s1287_s11, 3  ;;  %p388_p10 = scmp.lt.s32.totalorder (!%p320_p8), %s1087_s30, 2 }
  0x18   : > { %323 = sbr.rel (%p320_p8) target bundleno = 732 (0x2dc), region = 44  ;;  %p390_p11 = scmp.lt.s32.totalorder (!%p320_p8), %s1083_s29, 1 }
  0x19   : > { %s1289_s11 = smov (%p44_p9, %s1287_s11), 0  ;;  %s888_s12 = sshll.u32 (!%p320_p8), %s1087_s30, 1 }
  0x1a   : > { %1276 = sst [smem:[#allocation7_spill]] %s1289_s11  ;;  %s400_s15 = sadd.s32 (!%p320_p8), %s1083_s29, %s888_s12 }
  0x1b   : > { %s401_s17 = sld [smem:[#allocation4 + %s400_s15]] (!%p320_p8)  ;;  %p897_p13 = scmp.ne.s32.totalorder (!%p320_p8), %s1083_s29, 0 }
  0x1c   : > { %s1277_s1 = sld [smem:[#allocation8_spill]] (!%p320_p8) }
  0x1f   : > { %s1291_s30 = smov (!%p388_p10, %s1087_s30), 2  ;;  %v1102_v1 = vmov (!%p897_p13), 0.0   ;;  %vm1103_vm0 = vmmov (!%p897_p13), 0  }
  0x20   : > { %s391_s13 = scalar_select %p390_p11, %s1083_s29, 1 }
  0x21   : > { %s886_s14 = sshll.u32 %s1291_s30, 1  ;;  %s890_s19 = sshll.u32 %s1291_s30, 2  ;;  %940 = vmatprep.subr.bf16.mxu0 (!%p897_p13), %v1102_v1  ;;  %956 = vmatprep.mubr.msk.bf16.mxu0 (!%p897_p13), %vm1103_vm0, %v1102_v1 }
  0x22   : > { %s396_s16 = sadd.s32 %s886_s14, %s391_s13  ;;  %s1196_s25 = scalar_lea.vmem %s1269_s3, %s890_s19 }
  0x23   : > { %s887_s18 = sshll.u32 %s396_s16, 2  ;;  %s891_s26 = sshll.u32 %s391_s13, 4  ;;  %v445_v9 = vld [vmem:[%s1196_s25] sm:$0xf] (!%p897_p13) }
  0x24   : > { %s1191_s22 = scalar_lea.vmem %s1277_s1, %s887_s18  ;;  %s892_s27 = sshll.u32 %s1291_s30, 5 }
  0x25   : > { %s422_s28 = sadd.s32 %s892_s27, %s891_s26  ;;  %s919_s11 = sshll.u32 %s1291_s30, 6 }
  0x26   : > { %s893_s10 = sshll.u32 %s422_s28, 2  ;;  %s1203_s15 = scalar_lea.vmem %s1271_s5, %s919_s11 }
  0x27   : > { %p402_p12 = scmp.lt.s32.totalorder %s401_s17, 2  ;;  %s1208_s18 = scalar_lea.vmem %s1270_s4, %s893_s10  ;;  %v1031_v0 = vld [vmem:[%s1203_s15] sm:$0xff] (!%p897_p13)   ;;  %v1032_v2 = vld [vmem:[%s1203_s15 + $0x8] sm:$0xff] (!%p897_p13)   ;;  %v1033_v3 = vld [vmem:[%s1203_s15 + $0x10] sm:$0xff] (!%p897_p13)  }
  0x28   : > { %s432_s24 = scalar_lea.vmem %s1272_s6, %s1291_s30  ;;  %s1217_s26 = scalar_lea.vmem %s1273_s7, %s890_s19  ;;  %941 = vmatpush3.bf16.msra.mxu0 (!%p897_p13), %v1031_v0  ;;  %v1034_v4 = vld [vmem:[%s1203_s15 + $0x18] sm:$0xff] (!%p897_p13)   ;;  %v1035_v5 = vld [vmem:[%s1203_s15 + $0x20] sm:$0xff] (!%p897_p13)   ;;  %v1036_v6 = vld [vmem:[%s1203_s15 + $0x28] sm:$0xff] (!%p897_p13)  }
  0x29   : > { %s1293_s17 = smov (!%p402_p12, %s401_s17), 2  ;;  %444 = sbr.rel (%p897_p13) target bundleno = 286 (0x11e), region = 48 }
  0x2a   : > { %s889_s27 = sshll.u32 %s1293_s17, 2  ;;  %942 = vmatprep.subr.bf16.mxu0 (!%p897_p13), %v1102_v1  ;;  %v1037_v7 = vld [vmem:[%s1203_s15 + $0x30] sm:$0xff] (!%p897_p13)   ;;  %v1038_v8 = vld [vmem:[%s1203_s15 + $0x38] sm:$0xff] (!%p897_p13)   ;;  %v898_v10 = vld [vmem:[%s432_s24] ss:$0 sm:$0xff] (!%p897_p13) }
  0x2b   : > { %s1222_s12 = scalar_lea.vmem %s1268_s2, %s889_s27 }
  0x2c   : > { %943 = vmatpush3.bf16.msra.mxu0 (!%p897_p13), %v1032_v2 }
  0x2d   : > { %944 = vmatprep.subr.bf16.mxu0 (!%p897_p13), %v1102_v1 }
  0x30   : > { %945 = vmatpush3.bf16.msra.mxu0 %v1033_v3 }
  0x31   : > { %946 = vmatprep.subr.bf16.mxu0 %v1102_v1 }
  0x34   : > { %947 = vmatpush3.bf16.msra.mxu0 %v1034_v4 }
  0x35   : > { %948 = vmatprep.subr.bf16.mxu0 %v1102_v1 }
  0x38   : > { %949 = vmatpush3.bf16.msra.mxu0 %v1035_v5 }
  0x39   : > { %950 = vmatprep.subr.bf16.mxu0 %v1102_v1 }
  0x3c   : > { %951 = vmatpush3.bf16.msra.mxu0 %v1036_v6 }
  0x3d   : > { %952 = vmatprep.subr.bf16.mxu0 %v1102_v1 }
  0x40   : > { %953 = vmatpush3.bf16.msra.mxu0 %v1037_v7 }
  0x41   : > { %954 = vmatprep.subr.bf16.mxu0 %v1102_v1 }
  0x44   : > { %955 = vmatpush3.bf16.msra.mxu0 %v1038_v8 }
  0x47   : > { %957 = vmatmul.mubr.bf16.vlgmr.msra.gmra.mrb[0].mxu0 %v445_v9 }
 0x11a   : > { %v551_v11 = vpop.f32.mrb[0].mxu0 }
 0x11b   : > { %v552_v12 = vadd.f32 %v898_v10, %v551_v11  ;;  %v958_v13 = vpop.f32.mrb[1].mxu0 }
 0x11c   : > { %v554_v14 = vpop.f32.mrb[2].mxu0 }
 0x11d   : > { %557 = vst [vmem:[#allocation2] sm:$0xff] %v552_v12  ;;  %v959_v15 = vpop.f32.mrb[3].mxu0 }
 0x11e PF: > { %v559_v16 = vld [vmem:[%s1222_s12] sm:$0xf]  ;;  %vm564_vm1 = vcmask 1043456   ;;  %vm560_vm2 = vcmask 64512   ;;  %v1104_v17 = vmov 0.0   ;;  %vm1105_vm3 = vmmov 0  }
 0x11f   : > { %960 = vmatprep.subr.bf16.mxu0 %v1104_v17  ;;  %v566_v18 = vsel %vm564_vm1, %v559_v16, 0  ;;  %962 = vmatprep.mubr.msk.bf16.mxu0 %vm1105_vm3, %v1104_v17  ;;  %v558_v19 = vld [vmem:[%s1191_s22] sm:$0xf]  ;;  %v1040_v21 = vld [vmem:[%s1208_s18 + $0x8] sm:$0xff]   ;;  %v1041_v22 = vld [vmem:[%s1208_s18 + $0x10] sm:$0xff]   ;;  %p916_p0 = scmp.ne.s32.totalorder %s1083_s29, 1 }
 0x120   : > { %v1039_v20 = vld [vmem:[%s1208_s18] sm:$0xff]   ;;  %961 = vmatpush3.bf16.msra.mxu0 %v566_v18  ;;  %966 = vmatprep.subr.bf16.mxu1 %v1104_v17  ;;  %v1042_v23 = vld [vmem:[%s1208_s18 + $0x18] sm:$0xff]   ;;  %v1044_v25 = vld [vmem:[%s1208_s18 + $0x28] sm:$0xff]  }
 0x121   : > { %967 = vmatpush3.bf16.msra.mxu1 %v1039_v20  ;;  %982 = vmatprep.mubr.msk.bf16.mxu1 %vm1105_vm3, %v1104_v17  ;;  %v1043_v24 = vld [vmem:[%s1208_s18 + $0x20] sm:$0xff]   ;;  %v1045_v26 = vld [vmem:[%s1208_s18 + $0x30] sm:$0xff]   ;;  %v1046_v27 = vld [vmem:[%s1208_s18 + $0x38] sm:$0xff]  }
 0x122   : > { %968 = vmatprep.subr.bf16.mxu1 %v1104_v17 }
 0x123   : > { %963 = vmatmul.mubr.msk.bf16.vlgmr.msra.gmra.mrb[0].mxu0 %vm560_vm2, %v558_v19 }
 0x124   : > { %v608_v33 = vld [vmem:[#allocation2] sm:$0xff] }
 0x125   : > { %969 = vmatpush3.bf16.msra.mxu1 %v1040_v21 }
 0x126   : > { %970 = vmatprep.subr.bf16.mxu1 %v1104_v17 }
 0x129   : > { %971 = vmatpush3.bf16.msra.mxu1 %v1041_v22 }
 0x12a   : > { %972 = vmatprep.subr.bf16.mxu1 %v1104_v17 }
 0x12d   : > { %973 = vmatpush3.bf16.msra.mxu1 %v1042_v23 }
 0x12e   : > { %974 = vmatprep.subr.bf16.mxu1 %v1104_v17 }
 0x131   : > { %975 = vmatpush3.bf16.msra.mxu1 %v1043_v24 }
 0x132   : > { %976 = vmatprep.subr.bf16.mxu1 %v1104_v17 }
 0x135   : > { %977 = vmatpush3.bf16.msra.mxu1 %v1044_v25 }
 0x136   : > { %978 = vmatprep.subr.bf16.mxu1 %v1104_v17 }
 0x139   : > { %979 = vmatpush3.bf16.msra.mxu1 %v1045_v26 }
 0x13a   : > { %980 = vmatprep.subr.bf16.mxu1 %v1104_v17 }
 0x13d   : > { %981 = vmatpush3.bf16.msra.mxu1 %v1046_v27 }
 0x1f6   : > { %v602_v28 = vpop.f32.mrb[0].mxu0 }
 0x1f7   : > { %v609_v29 = vpack.c.bf16 %v602_v28, %v602_v28  ;;  %v964_v30 = vpop.f32.mrb[1].mxu0 }
 0x1f8   : > { %v605_v31 = vpop.f32.mrb[2].mxu0 }
 0x1f9   : > { %v965_v32 = vpop.f32.mrb[3].mxu0  ;;  %983 = vmatmul.mubr.bf16.vlgmr.msra.gmra.mrb[0].mxu1 %v609_v29 }
 0x2c9   : > { %719 = sbr.rel (%p916_p0) target bundleno = 732 (0x2dc), region = 52 }
 0x2cc   : > { %v708_v34 = vpop.f32.mrb[0].mxu1 }
 0x2cd   : > { %v714_v35 = vadd.f32 %v708_v34, %v608_v33  ;;  %v984_v36 = vpop.f32.mrb[1].mxu1 }
 0x2ce   : > { %v711_v37 = vpop.f32.mrb[2].mxu1 }
 0x2cf   : > { %715 = vst [vmem:[#allocation2] sm:$0xff] %v714_v35  ;;  %v985_v38 = vpop.f32.mrb[3].mxu1 }
 0x2d6   : > { %v720_v39 = vld [vmem:[#allocation2] sm:$0xff] }
 0x2d7   : > { %v721_v40 = vmax.f32 %v720_v39, 0.0 }
 0x2d9   : > { %v722_v41 = vpack.c.bf16 %v721_v40, %v721_v40 }
 0x2db   : > { %723 = vst [vmem:[%s1217_s26] sm:$0xf] %v722_v41 }
 0x2dc PF: > { %s23_s9 = sadd.s32 1, %s1099_s9   ;;  %s1278_s17 = sld [smem:[#allocation6_spill]] }
 0x2dd   : > { %p20_p1 = scmp.ge.s32.totalorder %s23_s9, 8   ;;  %s1279_s19 = sld [smem:[#allocation7_spill]] }
 0x2de   : > { %s1280_s29 = smov %s1091_s8  ;;  %s1281_s30 = smov %s1095_s0 }
 0x2df   :  { %22 = sbr.rel (!%p20_p1) target bundleno = 18 (0x12), region = 97 }
 0x2e2   : > { %s1282_s8 = smov %s1278_s17 }
 0x2e3   : > { %s1283_s0 = smov %s1279_s19 }

// kernel: hetero_gnn_forward.3
= control target key start
LH: loop header
LB: loop body
LE: loop exit
PB: predicated region body
PF: predicated region fallthrough
CT: control target
= control target key end

     0   :  { %8 = vsyncpa [#allocation3], 0  ;;  %s1634_s0 = inlined_call_operand.hbm [shape: bf16[3,8,768], index: 0, kind: input, shape index: {}]   ;;  %s1635_s1 = inlined_call_operand.hbm [shape: bf16[3,768,128], index: 1, kind: input, shape index: {}]   ;;  %s1636_s2 = inlined_call_operand.hbm [shape: f32[3,1,128], index: 2, kind: input, shape index: {}]   ;;  %s1637_s3 = inlined_call_operand.vmem [shape: bf16[3,8,128], index: 3, kind: output, shape index: {}]  }
   0x1   :  { %10 = vsyncpa [#allocation3 + $0x1], 0 }
   0x2   :  { %11 = vsyncpa [#allocation5], 0 }
   0x3   :  { %13 = vsyncpa [#allocation5 + $0x1], 0  ;;  %s1377_s12 = smov 0   ;;  %s1379_s13 = smov 0  }
   0x4   :  { %s1381_s14 = smov 0   ;;  %s1383_s15 = smov 0  }
   0x5   :  { %s1385_s16 = smov 0   ;;  %s1387_s17 = smov 0  }
   0x6 LB: > { %s1639_s18 = sadd.s32 4294967295, %s1350_s17   ;;  %s31_s19 = sadd.s32 1, %s1346_s16  ;;  %s1350_s17 = sphi %s1387_s17, %s19_s17   ;;  %s1346_s16 = sphi %s1385_s16, %s1654_s16   ;;  %s1342_s15 = sphi %s1383_s15, %s1653_s15   ;;  %s1338_s14 = sphi %s1381_s14, %s1652_s14   ;;  %s1334_s13 = sphi %s1379_s13, %s1651_s13   ;;  %s1330_s12 = sphi %s1377_s12, %s1650_s12  }
   0x7   : > { %p33_p0 = scmp.ge.s32.totalorder %s31_s19, 3  ;;  %s40_s20 = sadd.s32 1, %s1338_s14 }
   0x8   : > { %p47_p1 = scmp.ne.s32.totalorder %s1338_s14, %s1334_s13  ;;  %p48_p2 = scmp.eq.s32.totalorder %s1350_s17, 0 }
   0x9   : > { %s1656_s19 = smov (%p33_p0, %s31_s19), 0  ;;  %p53_p4 = scmp.ne.s32.totalorder %s1334_s13, %s1330_s12 }
   0xa   : > { %p49_p3 = por %p48_p2, %p47_p1  ;;  %s35_s21 = ssub.s32 %s1346_s16, %s1656_s19 }
   0xb   : > { %p54_p5 = scmp.eq.s32.totalorder %s1639_s18, 0  ;;  %p38_p6 = scmp.eq.s32.totalorder %s35_s21, 0 }
   0xc   : > { %p1101_p8 = scmp.lt.s32.totalorder %s1350_s17, 3  ;;  %s1427_s24 = sand.u32 1, %s1338_s14  }
   0xd   : > { %p1418_p7 = por %p54_p5, %p53_p4  ;;  %s178_s26 = sand.u32 1, %s1350_s17  }
   0xe   : > { %s1424_s23 = scalar_select %p38_p6, %s1338_s14, %s40_s20  }
   0xf   : > { %s1641_s22 = scalar_select %p1418_p7, 1, 0 }
  0x10   : > { %p1429_p9 = pnand %p1101_p8, %p49_p3  ;;  %s1081_s27 = smul.u32 384, %s1427_s24 }
  0x11   : > { %s1082_s28 = smul.u32 6144, %s1346_s16  ;;  %s1444_s7 = scalar_lea.sflag [#allocation5], %s178_s26 }
  0x12   : > { %s1642_s25 = scalar_select %p1429_p9, 1, 0 }
  0x13   : > { %s182_s29 = scalar_lea.vmem [#allocation4], %s1081_s27  ;;  %s1439_s6 = scalar_lea.hbm %s1635_s1, %s1082_s28 }
  0x14   : > { %s189_s30 = sshll.u32 %s182_s29, 4  ;;  %s1206_s8 = scalar_lea.hbm %s1439_s6, 6144  ;;  %s1441_s30 = int_to_ptr.vmem [resolvable:$true] %s189_s30 }
  0x15   : > { %p1207_p11 = scmp.ne.s32.totalorder %s1439_s6, %s1206_s8  ;;  %p1450_p12 = pneg %p1429_p9 }
  0x16   : > { %s1211_s12 = scalar_lea.hbm %s1635_s1, 18432  ;;  %p1212_p1 = scmp.lt.u32.totalorder %s1439_s6, %s1635_s1 }
  0x17   : > { %p1209_p13 = pnand %p1450_p12, %p1207_p11  ;;  %p1213_p2 = scmp.lt.u32.totalorder %s1211_s12, %s1206_s8 }
  0x18   : > { %p1215_p4 = scmp.lt.u32.totalorder %s1206_s8, %s1439_s6 }
  0x19   : > { %p1210_p0 = pneg %p1209_p13  ;;  %p1214_p3 = por %p1213_p2, %p1212_p1 }
  0x1b   : > { %p1216_p5 = por %p1215_p4, %p1214_p3 }
  0x1d   : > { %p1217_p6 = pnand %p1216_p5, %p1210_p0 }
  0x1f   : > { %1220 = shalt.err (!%p1217_p6)
}
  0x20   : > { %s1221_s26 = scalar_lea.vmem %s1441_s30, 6144  ;;  %s1352_s27 = smov [#allocation4]  }
  0x21   : > { %p1222_p8 = scmp.ne.s32.totalorder %s1441_s30, %s1221_s26  ;;  %s1226_s28 = sshll.u32 %s1352_s27, 4  ;;  %s1227_s28 = int_to_ptr.vmem [resolvable:$false] %s1226_s28 }
  0x22   : > { %s1228_s29 = scalar_lea.vmem %s1227_s28, 12288  ;;  %p1229_p10 = scmp.lt.s32.totalorder %s1441_s30, %s1227_s28 }
  0x23   : > { %p1224_p11 = pnand %p1222_p8, %p1450_p12  ;;  %p1230_p7 = scmp.lt.s32.totalorder %s1228_s29, %s1221_s26 }
  0x25   : > { %p1225_p13 = pneg %p1224_p11  ;;  %p1231_p1 = por %p1230_p7, %p1229_p10 }
  0x27   : > { %p1232_p2 = pnand %p1231_p1, %p1225_p13 }
  0x29   : > { %1235 = shalt.err (!%p1232_p2)
}
  0x2a   : > { %s1353_s4 = smov 64   ;;  %s1354_s5 = smov 4  }
  0x2b   : > { %1097 = dma.hbm_to_vmem [thread:$0]  (!%p1429_p9), %s1439_s6, 6144, %s1441_s30, %s1444_s7, %s1353_s4, %s1353_s4, %s1354_s5  }
  0x2c   : > { %p214_p0 = scmp.lt.s32.totalorder %s1350_s17, 4  ;;  %p1644_p3 = scmp.ge.s32.totalorder %s1350_s17, 1 }
  0x2d   : > { %s1079_s10 = smul.u32 24, %s1427_s24  ;;  %s953_s12 = sshll.u32 %s1346_s16, 4 }
  0x2e   : > { %p1477_p7 = pnand %p1644_p3, %p214_p0  ;;  %s1080_s11 = smul.u32 384, %s1346_s16 }
  0x2f   : > { %s161_s27 = scalar_lea.vmem [#allocation2], %s1079_s10  ;;  %s1494_s29 = scalar_lea.hbm %s1636_s2, %s953_s12 }
  0x30   : > { %s1645_s8 = scalar_select %p1477_p7, 1, 0 }
  0x31   : > { %s1487_s26 = scalar_lea.hbm %s1634_s0, %s1080_s11  ;;  %s171_s30 = sshll.u32 %s161_s27, 4  ;;  %s1489_s30 = int_to_ptr.vmem [resolvable:$true] %s171_s30 }
  0x32   : > { %s158_s4 = scalar_lea.sflag [#allocation3], %s1427_s24  ;;  %s1236_s5 = scalar_lea.hbm %s1487_s26, 384 }
  0x33   : > { %p1237_p10 = scmp.ne.s32.totalorder %s1487_s26, %s1236_s5  ;;  %s1241_s21 = scalar_lea.hbm %s1634_s0, 1152 }
  0x34   : > { %p1242_p6 = scmp.lt.u32.totalorder %s1487_s26, %s1634_s0  ;;  %p1243_p8 = scmp.lt.u32.totalorder %s1241_s21, %s1236_s5 }
  0x35   : > { %p1239_p4 = pnand %p1237_p10, %p1450_p12  ;;  %p1245_p13 = scmp.lt.u32.totalorder %s1236_s5, %s1487_s26 }
  0x36   : > { %p1244_p11 = por %p1243_p8, %p1242_p6 }
  0x37   : > { %p1240_p5 = pneg %p1239_p4 }
  0x38   : > { %p1246_p1 = por %p1245_p13, %p1244_p11 }
  0x3a   : > { %p1247_p2 = pnand %p1246_p1, %p1240_p5 }
  0x3c   : > { %1250 = shalt.err (!%p1247_p2)
}
  0x3d   : > { %s1251_s12 = scalar_lea.vmem %s1489_s30, 384  ;;  %s1355_s27 = smov [#allocation2]  }
  0x3e   : > { %p1252_p0 = scmp.ne.s32.totalorder %s1489_s30, %s1251_s12  ;;  %s1256_s6 = sshll.u32 %s1355_s27, 4  ;;  %s1257_s6 = int_to_ptr.vmem [resolvable:$false] %s1256_s6 }
  0x3f   : > { %s1258_s18 = scalar_lea.vmem %s1257_s6, 768  ;;  %p1259_p4 = scmp.lt.s32.totalorder %s1489_s30, %s1257_s6 }
  0x40   : > { %p1254_p3 = pnand %p1252_p0, %p1450_p12  ;;  %p1260_p7 = scmp.lt.s32.totalorder %s1258_s18, %s1251_s12 }
  0x42   : > { %p1255_p10 = pneg %p1254_p3  ;;  %p1261_p6 = por %p1260_p7, %p1259_p4 }
  0x44   : > { %p1262_p8 = pnand %p1261_p6, %p1255_p10 }
  0x46   : > { %1265 = shalt.err (!%p1262_p8)
}
  0x47   : > { %1094 = dma.hbm_to_vmem [thread:$0]  (!%p1429_p9), %s1487_s26, 384, %s1489_s30, %s158_s4  }
  0x48   : > { %s202_s28 = scalar_lea.vmem [#allocation6], %s1427_s24  ;;  %s1266_s11 = scalar_lea.hbm %s1494_s29, 16 }
  0x49   : > { %s209_s5 = sshll.u32 %s202_s28, 4  ;;  %p1267_p5 = scmp.ne.s32.totalorder %s1494_s29, %s1266_s11  ;;  %s210_s5 = int_to_ptr.vmem [resolvable:$true] %s209_s5 }
  0x4a   : > { %s1271_s10 = scalar_lea.hbm %s1636_s2, 48  ;;  %p1272_p13 = scmp.lt.u32.totalorder %s1494_s29, %s1636_s2 }
  0x4b   : > { %p1269_p7 = pnand %p1267_p5, %p1450_p12  ;;  %p1273_p1 = scmp.lt.u32.totalorder %s1271_s10, %s1266_s11 }
  0x4c   : > { %p1275_p0 = scmp.lt.u32.totalorder %s1266_s11, %s1494_s29 }
  0x4d   : > { %p1270_p11 = pneg %p1269_p7  ;;  %p1274_p2 = por %p1273_p1, %p1272_p13 }
  0x4f   : > { %p1276_p3 = por %p1275_p0, %p1274_p2 }
  0x51   : > { %p1277_p10 = pnand %p1276_p3, %p1270_p11 }
  0x53   : > { %1280 = shalt.err (!%p1277_p10)
}
  0x54   : > { %s1281_s24 = scalar_lea.vmem %s210_s5, 16  ;;  %s1356_s26 = smov [#allocation6]  }
  0x55   : > { %p1282_p4 = scmp.ne.s32.totalorder %s210_s5, %s1281_s24  ;;  %s1286_s30 = sshll.u32 %s1356_s26, 4  ;;  %s1287_s30 = int_to_ptr.vmem [resolvable:$false] %s1286_s30 }
  0x56   : > { %s1288_s4 = scalar_lea.vmem %s1287_s30, 32  ;;  %p1289_p5 = scmp.lt.s32.totalorder %s210_s5, %s1287_s30 }
  0x57   : > { %p1284_p6 = pnand %p1282_p4, %p1450_p12  ;;  %p1290_p7 = scmp.lt.s32.totalorder %s1288_s4, %s1281_s24 }
  0x59   : > { %p1285_p8 = pneg %p1284_p6  ;;  %p1291_p9 = por %p1290_p7, %p1289_p5 }
  0x5b   : > { %p1292_p1 = pnand %p1291_p9, %p1285_p8 }
  0x5d   : > { %1295 = shalt.err (!%p1292_p1)
}
  0x5e   : > { %p1646_p13 = scmp.ne.s32.totalorder %s1642_s25, 0  ;;  %p1647_p11 = scmp.ne.s32.totalorder %s1645_s8, 0 }
  0x5f   : > { %s1540_s9 = sand.u32 (!%p1647_p11), 1, %s1334_s13   ;;  %p1648_p9 = scmp.ne.s32.totalorder (!%p1647_p11), %s1641_s22, 0 }
  0x60   : > { %1100 = dma.hbm_to_vmem [thread:$0]  (!%p1646_p13), %s1494_s29, 16, %s210_s5, %s1444_s7  }
  0x61   : > { %218 = sbr.rel (%p1647_p11) target bundleno = 396 (0x18c), region = 32  ;;  %s221_s18 = scalar_lea.sflag (!%p1647_p11), [#allocation3], %s1540_s9 }
  0x62   : > { %s1083_s6 = smul.u32 (!%p1647_p11), 24, %s1540_s9 }
  0x64   : > { %s1544_s28 = scalar_lea.vmem (!%p1647_p11), [#allocation2], %s1083_s6 }
  0x68   : > { %1321 = dma.done.wait (%p1648_p9), %s221_s18, 384  }
  0x69   : > { %1323 = vsyncadd (%p1648_p9), %s221_s18, 4294966912  ;;  %s1649_s25 = sadd.s32 4294967295, %s1350_s17   ;;  %s1084_s8 = smul.u32 384, %s1540_s9 }
  0x6a   : > { %s229_s7 = sand.u32 1, %s1649_s25  }
  0x6b   : > { %s230_s29 = scalar_lea.sflag [#allocation5], %s229_s7  ;;  %s1553_s5 = scalar_lea.vmem [#allocation4], %s1084_s8 }
  0x6c   : > { %1325 = dma.done.wait (%p1648_p9), %s230_s29, 6160  }
  0x6d   : > { %1327 = vsyncadd (%p1648_p9), %s230_s29, 4294961136  ;;  %v1152_v0 = vld [vmem:[%s1553_s5 + $0x40] sm:$0xff]   ;;  %v1156_v4 = vld [vmem:[%s1553_s5 + $0x48] sm:$0xff]   ;;  %s241_s22 = scalar_lea.vmem [#allocation6], %s1540_s9  ;;  %p275_p12 = scmp.lt.s32.totalorder %s1342_s15, 2 }
  0x6e   : > { %v1153_v1 = vld [vmem:[%s1553_s5] sm:$0xff]   ;;  %1013 = vmatprep.subr.bf16.mxu0 %v1152_v0  ;;  %v1157_v5 = vld [vmem:[%s1553_s5 + $0x8] sm:$0xff]   ;;  %v1160_v8 = vld [vmem:[%s1553_s5 + $0x50] sm:$0xff]  }
  0x6f   : > { %v1154_v2 = vld [vmem:[%s1553_s5 + $0xc0] sm:$0xff]   ;;  %1014 = vmatpush3.bf16.msra.mxu0 %v1153_v1  ;;  %v1158_v6 = vld [vmem:[%s1553_s5 + $0xc8] sm:$0xff]   ;;  %v1161_v9 = vld [vmem:[%s1553_s5 + $0x10] sm:$0xff]   ;;  %s1658_s15 = smov (!%p275_p12, %s1342_s15), 2 }
  0x70   : > { %v1155_v3 = vld [vmem:[%s1553_s5 + $0x80] sm:$0xff]   ;;  %1035 = vmatprep.subr.bf16.mxu1 %v1154_v2  ;;  %1015 = vmatprep.subr.bf16.mxu0 %v1156_v4  ;;  %v1159_v7 = vld [vmem:[%s1553_s5 + $0x88] sm:$0xff]   ;;  %v1162_v10 = vld [vmem:[%s1553_s5 + $0xd0] sm:$0xff]   ;;  %s955_s11 = sshll.u32 %s1658_s15, 2 }
  0x71   : > { %1036 = vmatpush3.bf16.msra.mxu1 %v1155_v3  ;;  %v1163_v11 = vld [vmem:[%s1553_s5 + $0x90] sm:$0xff]   ;;  %v1164_v12 = vld [vmem:[%s1553_s5 + $0x58] sm:$0xff]   ;;  %v1168_v16 = vld [vmem:[%s1553_s5 + $0x60] sm:$0xff]   ;;  %s281_s10 = scalar_lea.vmem %s1637_s3, %s955_s11 }
  0x72   : > { %1037 = vmatprep.subr.bf16.mxu1 %v1158_v6  ;;  %v1165_v13 = vld [vmem:[%s1553_s5 + $0x18] sm:$0xff]   ;;  %v1169_v17 = vld [vmem:[%s1553_s5 + $0x20] sm:$0xff]   ;;  %v1172_v20 = vld [vmem:[%s1553_s5 + $0x68] sm:$0xff]  }
  0x73   : > { %1016 = vmatpush3.bf16.msra.mxu0 %v1157_v5  ;;  %v1166_v14 = vld [vmem:[%s1553_s5 + $0xd8] sm:$0xff]   ;;  %v1170_v18 = vld [vmem:[%s1553_s5 + $0xe0] sm:$0xff]   ;;  %v1173_v21 = vld [vmem:[%s1553_s5 + $0x28] sm:$0xff]  }
  0x74   : > { %1017 = vmatprep.subr.bf16.mxu0 %v1160_v8  ;;  %v1167_v15 = vld [vmem:[%s1553_s5 + $0x98] sm:$0xff]   ;;  %v1171_v19 = vld [vmem:[%s1553_s5 + $0xa0] sm:$0xff]   ;;  %v1174_v22 = vld [vmem:[%s1553_s5 + $0xe8] sm:$0xff]  }
  0x75   : > { %1038 = vmatpush3.bf16.msra.mxu1 %v1159_v7  ;;  %v1175_v23 = vld [vmem:[%s1553_s5 + $0xa8] sm:$0xff]   ;;  %v1176_v24 = vld [vmem:[%s1553_s5 + $0x70] sm:$0xff]   ;;  %v1180_v28 = vld [vmem:[%s1553_s5 + $0x78] sm:$0xff]  }
  0x76   : > { %1039 = vmatprep.subr.bf16.mxu1 %v1162_v10  ;;  %v1177_v25 = vld [vmem:[%s1553_s5 + $0x30] sm:$0xff]   ;;  %v1181_v29 = vld [vmem:[%s1553_s5 + $0x38] sm:$0xff]   ;;  %v1186_v35 = vld [vmem:[%s1553_s5 + $0x140] sm:$0xff]  }
  0x77   : > { %1018 = vmatpush3.bf16.msra.mxu0 %v1161_v9  ;;  %v1178_v26 = vld [vmem:[%s1553_s5 + $0xf0] sm:$0xff]   ;;  %v1182_v30 = vld [vmem:[%s1553_s5 + $0xf8] sm:$0xff]   ;;  %v1189_v39 = vld [vmem:[%s1553_s5 + $0x100] sm:$0xff]  }
  0x78   : > { %1019 = vmatprep.subr.bf16.mxu0 %v1164_v12  ;;  %v1179_v27 = vld [vmem:[%s1553_s5 + $0xb0] sm:$0xff]   ;;  %v1185_v34 = vld [vmem:[%s1553_s5 + $0xb8] sm:$0xff]   ;;  %v1190_v40 = vld [vmem:[%s1553_s5 + $0x148] sm:$0xff]  }
  0x79   : > { %1040 = vmatpush3.bf16.msra.mxu1 %v1163_v11  ;;  %v283_v31 = vld [vmem:[%s1544_s28] sm:$0xff]  ;;  %v284_v36 = vld [vmem:[%s1544_s28 + $0x8] sm:$0xff]  ;;  %v1196_v46 = vld [vmem:[%s1553_s5 + $0x160] sm:$0xff]  }
  0x7a   : > { %1041 = vmatprep.subr.bf16.mxu1 %v1166_v14  ;;  %v957_v32 = vcombine.low %v283_v31, %v283_v31  ;;  %v958_v33 = vcombine.high %v283_v31, %v283_v31  ;;  %v959_v37 = vcombine.low %v284_v36, %v284_v36  ;;  %v960_v38 = vcombine.high %v284_v36, %v284_v36  ;;  %v1191_v41 = vld [vmem:[%s1553_s5 + $0x108] sm:$0xff]   ;;  %v1192_v42 = vld [vmem:[%s1553_s5 + $0x150] sm:$0xff]   ;;  %v1194_v44 = vld [vmem:[%s1553_s5 + $0x158] sm:$0xff]  }
  0x7b   : > { %1020 = vmatpush3.bf16.msra.mxu0 %v1165_v13  ;;  %v1193_v43 = vld [vmem:[%s1553_s5 + $0x110] sm:$0xff]   ;;  %v1195_v45 = vld [vmem:[%s1553_s5 + $0x118] sm:$0xff]   ;;  %v1197_v47 = vld [vmem:[%s1553_s5 + $0x120] sm:$0xff]  }
  0x7c   : > { %1021 = vmatprep.subr.bf16.mxu0 %v1168_v16  ;;  %730 = vmatprep.mubr.bf16.mxu0 %v958_v33  ;;  %v285_v48 = vld [vmem:[%s1544_s28 + $0x10] sm:$0xff]  ;;  %v1198_v49 = vld [vmem:[%s1553_s5 + $0x168] sm:$0xff]   ;;  %v1200_v52 = vld [vmem:[%s1553_s5 + $0x170] sm:$0xff]  }
  0x7d   : > { %1042 = vmatpush3.bf16.msra.mxu1 %v1167_v15  ;;  %770 = vmatprep.mubr.bf16.mxu1 %v960_v38  ;;  %v962_v50 = vcombine.high %v285_v48, %v285_v48  ;;  %v1199_v51 = vld [vmem:[%s1553_s5 + $0x128] sm:$0xff]   ;;  %v1201_v53 = vld [vmem:[%s1553_s5 + $0x130] sm:$0xff]   ;;  %v1202_v54 = vld [vmem:[%s1553_s5 + $0x178] sm:$0xff]   ;;  %v961_v56 = vcombine.low %v285_v48, %v285_v48 }
  0x7e   : > { %1043 = vmatprep.subr.bf16.mxu1 %v1170_v18  ;;  %v1203_v55 = vld [vmem:[%s1553_s5 + $0x138] sm:$0xff]   ;;  %v956_v58 = vld [vmem:[%s241_s22] ss:$0 sm:$0xff] }
  0x7f   : > { %1022 = vmatpush3.bf16.msra.mxu0 %v1169_v17 }
  0x80   : > { %1023 = vmatprep.subr.bf16.mxu0 %v1172_v20 }
  0x81   : > { %1044 = vmatpush3.bf16.msra.mxu1 %v1171_v19 }
  0x82   : > { %1045 = vmatprep.subr.bf16.mxu1 %v1174_v22 }
  0x83   : > { %1024 = vmatpush3.bf16.msra.mxu0 %v1173_v21 }
  0x84   : > { %1025 = vmatprep.subr.bf16.mxu0 %v1176_v24 }
  0x85   : > { %1046 = vmatpush3.bf16.msra.mxu1 %v1175_v23 }
  0x86   : > { %1047 = vmatprep.subr.bf16.mxu1 %v1178_v26 }
  0x87   : > { %1026 = vmatpush3.bf16.msra.mxu0 %v1177_v25 }
  0x88   : > { %1027 = vmatprep.subr.bf16.mxu0 %v1180_v28 }
  0x89   : > { %1048 = vmatpush3.bf16.msra.mxu1 %v1179_v27 }
  0x8a   : > { %1049 = vmatprep.subr.bf16.mxu1 %v1182_v30 }
  0x8b   : > { %1028 = vmatpush3.bf16.msra.mxu0 %v1181_v29 }
  0x8c   : > { %1057 = vmatprep.subr.bf16.mxu0 %v1186_v35 }
  0x8d   : > { %1050 = vmatpush3.bf16.msra.mxu1 %v1185_v34 }
  0x8e   : > { %731 = vmatmul.mubr.bf16.vlgmr.msra.gmra.mrb[0].mxu0 %v957_v32 }
  0x8f   : > { %1058 = vmatpush3.bf16.msra.mxu0 %v1189_v39  ;;  %810 = vmatprep.mubr.bf16.mxu0 %v962_v50 }
  0x90   : > { %771 = vmatmul.mubr.bf16.vlgmr.msra.gmra.mrb[0].mxu1 %v959_v37  ;;  %1059 = vmatprep.subr.bf16.mxu0 %v1190_v40 }
  0x93   : > { %1060 = vmatpush3.bf16.msra.mxu0 %v1191_v41 }
  0x94   : > { %1061 = vmatprep.subr.bf16.mxu0 %v1192_v42 }
  0x97   : > { %1062 = vmatpush3.bf16.msra.mxu0 %v1193_v43 }
  0x98   : > { %1063 = vmatprep.subr.bf16.mxu0 %v1194_v44 }
  0x9b   : > { %1064 = vmatpush3.bf16.msra.mxu0 %v1195_v45 }
  0x9c   : > { %1065 = vmatprep.subr.bf16.mxu0 %v1196_v46 }
  0x9f   : > { %1066 = vmatpush3.bf16.msra.mxu0 %v1197_v47 }
  0xa0   : > { %1067 = vmatprep.subr.bf16.mxu0 %v1198_v49 }
  0xa3   : > { %1068 = vmatpush3.bf16.msra.mxu0 %v1199_v51 }
  0xa4   : > { %1069 = vmatprep.subr.bf16.mxu0 %v1200_v52 }
  0xa7   : > { %1070 = vmatpush3.bf16.msra.mxu0 %v1201_v53 }
  0xa8   : > { %1071 = vmatprep.subr.bf16.mxu0 %v1202_v54 }
  0xab   : > { %1072 = vmatpush3.bf16.msra.mxu0 %v1203_v55 }
  0xae   : > { %811 = vmatmul.mubr.bf16.vlgmr.msra.gmra.mrb[4].mxu0 %v961_v56 }
 0x161   : > { %v1029_v57 = vpop.f32.mrb[0].mxu0 }
 0x162   : > { %v1030_v59 = vpop.f32.mrb[1].mxu0 }
 0x163   : > { %v1031_v60 = vadd.f32 %v1030_v59, %v1029_v57  ;;  %v1032_v61 = vpop.f32.mrb[2].mxu0  ;;  %v1051_v62 = vpop.f32.mrb[0].mxu1 }
 0x164   : > { %v1033_v63 = vpop.f32.mrb[3].mxu0  ;;  %v1052_v0 = vpop.f32.mrb[1].mxu1 }
 0x165   : > { %v733_v1 = vadd.f32 %v1031_v60, %v956_v58  ;;  %v1053_v2 = vadd.f32 %v1052_v0, %v1051_v62  ;;  %v1054_v3 = vpop.f32.mrb[2].mxu1 }
 0x166   : > { %v1055_v4 = vpop.f32.mrb[3].mxu1 }
 0x167   : > { %v773_v5 = vadd.f32 %v1053_v2, %v733_v1 }
 0x181   : > { %v1073_v6 = vpop.f32.mrb[4].mxu0 }
 0x182   : > { %v1074_v7 = vpop.f32.mrb[5].mxu0 }
 0x183   : > { %v1075_v8 = vadd.f32 %v1074_v7, %v1073_v6  ;;  %v1076_v9 = vpop.f32.mrb[6].mxu0 }
 0x184   : > { %v1077_v10 = vpop.f32.mrb[7].mxu0 }
 0x185   : > { %v813_v11 = vadd.f32 %v1075_v8, %v773_v5 }
 0x187   : > { %v818_v12 = vmax.f32 %v813_v11, 0.0 }
 0x189   : > { %v819_v13 = vpack.c.bf16 %v818_v12, %v818_v12 }
 0x18b   : > { %820 = vst [vmem:[%s281_s10] sm:$0xf] %v819_v13 }
 0x18c PF: > { %s19_s17 = sadd.s32 1, %s1350_s17   ;;  %s1650_s12 = smov %s1334_s13 }
 0x18d   : > { %p16_p2 = scmp.ge.s32.totalorder %s19_s17, 5   ;;  %s1651_s13 = smov %s1338_s14 }
 0x18e   : > { %s1652_s14 = smov %s1424_s23  ;;  %s1653_s15 = smov %s1346_s16 }
 0x18f   : > { %s1654_s16 = smov %s1656_s19  ;;  %18 = sbr.rel (!%p16_p2) target bundleno = 6 (0x6), region = 96 }
 0x196   :  { %846 = vsyncpa [#allocation3], 1 }
 0x197   :  { %848 = vsyncpa [#allocation3 + $0x1], 1 }
 0x198   :  { %849 = vsyncpa [#allocation5], 1 }
 0x199   :  { %851 = vsyncpa [#allocation5 + $0x1], 1 }

</bundles_post_ra>
